<compile_context>
chip_gen: v7x
topology: tpu7x:2x2x1
jax: 0.10.0
libtpu: 0.0.40
codegen_flags: <defaults>
</compile_context>

<pallas_src>
import jax
import jax.numpy as jnp
from jax.experimental import pallas as pl
from jax.experimental.pallas import tpu as pltpu


def _mlp_kernel(x_ref, w1_ref, b1_ref, w2_ref, b2_ref, o_ref):
    # layer1: (1, In) @ (In, Out) + (1, Out)  -> MXU matmul, f32 accumulate
    h = jnp.dot(x_ref[...], w1_ref[...], preferred_element_type=jnp.float32)
    h = h + b1_ref[...]
    # layer2: N=1 matmul replaced by VPU multiply + lane reduce.
    # w2_ref is the nn.Linear weight row (1, Out); b2_ref is (1, 1).
    y = jnp.sum(h * w2_ref[...], axis=-1, keepdims=True) + b2_ref[...]
    o_ref[...] = y.astype(o_ref.dtype)


def mlp_forward(x, w1, b1, w2_row, b2):
    """Computes layer2(layer1(x))[0][0] exactly as the PyTorch module does.

    Only row 0 of x is needed for the returned scalar, so we slice before the
    kernel launch and produce a (1, 1) output.
    """
    x0 = x[:1]  # (1, In) — the only row that influences the result
    out = pl.pallas_call(
        _mlp_kernel,
        out_shape=jax.ShapeDtypeStruct((1, 1), jnp.float32),
        in_specs=[
            pl.BlockSpec(memory_space=pltpu.VMEM),  # x0      (1, In)
            pl.BlockSpec(memory_space=pltpu.VMEM),  # w1      (In, Out)
            pl.BlockSpec(memory_space=pltpu.VMEM),  # b1      (1, Out)
            pl.BlockSpec(memory_space=pltpu.VMEM),  # w2_row  (1, Out)
            pl.BlockSpec(memory_space=pltpu.VMEM),  # b2      (1, 1)
        ],
        out_specs=pl.BlockSpec(memory_space=pltpu.VMEM),
    )(x0, w1, b1, w2_row, b2)
    return out[0, 0]


def init_params(key, input_size, output_size):
    """Deterministic init mimicking nn.Linear's U(-1/sqrt(fan_in), 1/sqrt(fan_in))."""
    k1, k2, k3, k4 = jax.random.split(key, 4)
    bound1 = 1.0 / jnp.sqrt(jnp.float32(input_size))
    bound2 = 1.0 / jnp.sqrt(jnp.float32(output_size))
    # layer1 weight stored pre-transposed: (In, Out)
    w1 = jax.random.uniform(k1, (input_size, output_size), jnp.float32, -bound1, bound1)
    b1 = jax.random.uniform(k2, (1, output_size), jnp.float32, -bound1, bound1)
    # layer2 weight kept in its native nn.Linear layout: (1, Out)
    w2_row = jax.random.uniform(k3, (1, output_size), jnp.float32, -bound2, bound2)
    b2 = jax.random.uniform(k4, (1, 1), jnp.float32, -bound2, bound2)
    return w1, b1, w2_row, b2


if __name__ == "__main__":
    input_size = 32
    output_size = 16
    batch = 2

    key = jax.random.PRNGKey(0)
    kx, kp = jax.random.split(key)
    x = jax.random.normal(kx, (batch, input_size), jnp.float32)
    w1, b1, w2_row, b2 = init_params(kp, input_size, output_size)

    y = mlp_forward(x, w1, b1, w2_row, b2)
    jax.block_until_ready(y)

    # Reference check in plain JAX (full module semantics, then [0][0])
    h_ref = x @ w1 + b1                 # layer1
    y_ref = h_ref @ w2_row.T + b2       # layer2
    ref = y_ref[0, 0]
    assert jnp.allclose(y, ref, atol=1e-5, rtol=1e-5), (y, ref)

    print("KERNEL_OK")
</pallas_src>

<mosaic_0001>
module attributes {stable_mosaic.version = 11 : i64} {
  func.func @_mlp_kernel(%arg0: memref<1x32xf32, #tpu.memory_space<vmem>>, %arg1: memref<32x16xf32, #tpu.memory_space<vmem>>, %arg2: memref<1x16xf32, #tpu.memory_space<vmem>>, %arg3: memref<1x16xf32, #tpu.memory_space<vmem>>, %arg4: memref<1x1xf32, #tpu.memory_space<vmem>>, %arg5: memref<1x1xf32, #tpu.memory_space<vmem>>) attributes {dimension_semantics = [], scalar_prefetch = 0 : i64, scratch_operands = 0 : i64, tpu.core_type = #tpu.core_type<tc>} {
    %c0 = arith.constant 0 : index
    %c0_0 = arith.constant 0 : index
    %0 = vector.load %arg0[%c0, %c0_0] : memref<1x32xf32, #tpu.memory_space<vmem>>, vector<1x32xf32>
    %c0_1 = arith.constant 0 : index
    %c0_2 = arith.constant 0 : index
    %1 = vector.load %arg1[%c0_1, %c0_2] : memref<32x16xf32, #tpu.memory_space<vmem>>, vector<32x16xf32>
    %cst = arith.constant dense<0.000000e+00> : vector<1x16xf32>
    %2 = tpu.matmul %0, %1, %cst {dimension_numbers = #tpu.dot_dimension_numbers<[1], [0], [0], [1], [0, 0, 1, 1], [], []>} : vector<1x32xf32>, vector<32x16xf32>, vector<1x16xf32> -> vector<1x16xf32>
    %c0_3 = arith.constant 0 : index
    %c0_4 = arith.constant 0 : index
    %3 = vector.load %arg2[%c0_3, %c0_4] : memref<1x16xf32, #tpu.memory_space<vmem>>, vector<1x16xf32>
    %4 = arith.addf %2, %3 : vector<1x16xf32>
    %c0_5 = arith.constant 0 : index
    %c0_6 = arith.constant 0 : index
    %5 = vector.load %arg3[%c0_5, %c0_6] : memref<1x16xf32, #tpu.memory_space<vmem>>, vector<1x16xf32>
    %6 = arith.mulf %4, %5 : vector<1x16xf32>
    %cst_7 = arith.constant dense<0.000000e+00> : vector<1xf32>
    %7 = vector.multi_reduction <add>, %6, %cst_7 [1] : vector<1x16xf32> to vector<1xf32>
    %8 = vector.shape_cast %7 : vector<1xf32> to vector<1x1xf32>
    %c0_8 = arith.constant 0 : index
    %c0_9 = arith.constant 0 : index
    %9 = vector.load %arg4[%c0_8, %c0_9] : memref<1x1xf32, #tpu.memory_space<vmem>>, vector<1x1xf32>
    %10 = arith.addf %8, %9 : vector<1x1xf32>
    %c0_10 = arith.constant 0 : index
    %c0_11 = arith.constant 0 : index
    %11 = vector.load %arg5[%c0_10, %c0_11] : memref<1x1xf32, #tpu.memory_space<vmem>>, vector<1x1xf32>
    tpu.vector_store %arg5[%c0_10, %c0_11], %10 {strides = array<i32>} : memref<1x1xf32, #tpu.memory_space<vmem>>, vector<1x1xf32>,
    return
  }
}

</mosaic_0001>

<bundles_post_ra>
// kernel: tpu_custom_call.1
= control target key start
LH: loop header
LB: loop body
LE: loop exit
PB: predicated region body
PF: predicated region fallthrough
CT: control target
= control target key end

     0   :  { %s248_s0 = inlined_call_operand.vmem [shape: f32[1,32], index: 0, kind: input, shape index: {}]   ;;  %s249_s1 = inlined_call_operand.vmem [shape: f32[32,16], index: 1, kind: input, shape index: {}]   ;;  %s250_s2 = inlined_call_operand.vmem [shape: f32[1,16], index: 2, kind: input, shape index: {}]   ;;  %s251_s3 = inlined_call_operand.vmem [shape: f32[1,16], index: 3, kind: input, shape index: {}]   ;;  %s252_s4 = inlined_call_operand.<no memory space> [shape: f32[1,1], index: 4, kind: input, shape index: {}]   ;;  %s253_s5 = inlined_call_operand.hbm [shape: f32[1,1], index: 5, kind: output, shape index: {}]  }
   0x1   :  { %v10_v0 = vstv %s252_s4 }
   0x2   :  { %11 = vst [vmem:[#allocation2] sm:$0x1] %v10_v0 }
   0x3   :  { %v24_v1 = vld [vmem:[%s249_s1] sm:$0xff]  ;;  %v25_v2 = vld [vmem:[%s249_s1 + $0x8] sm:$0xff]  ;;  %v26_v3 = vld [vmem:[%s249_s1 + $0x10] sm:$0xff]  ;;  %v178_v4 = vmov 0.0|0.0   ;;  %vm179_vm0 = vmmov 0   ;;  %v180_v7 = vmov 0.0  }
   0x4   :  { %144 = vmatprep.subr.bf16.mxu0 %v178_v4  ;;  %v145_v5 = vpack.c.bf16 %v25_v2, %v24_v1  ;;  %v27_v6 = vld [vmem:[%s249_s1 + $0x18] sm:$0xff]  ;;  %141 = vmatprep.mubr.msk.f32.mxu0 %vm179_vm0, %v180_v7 }
   0x5   :  { %12 = vsyncpa [#allocation4], 0  ;;  %v148_v8 = vpack.c.bf16 %v27_v6, %v26_v3  ;;  %v23_v9 = vld [vmem:[%s248_s0] sm:$0x1]  ;;  %vm29_vm1 = vcmask 261120   ;;  %vm105_vm2 = vcmask 122880  }
   0x6   :  { %146 = vmatpush3.bf16.msra.mxu0 %v145_v5  ;;  %v28_v10 = vld [vmem:[%s250_s2] sm:$0x1]  ;;  %s181_s7 = smov [#allocation3]   ;;  %vm111_vm3 = vcmask 0  }
   0x7   :  { %147 = vmatprep.subr.bf16.mxu0 %v178_v4  ;;  %v103_v12 = vld [vmem:[%s251_s3] sm:$0x1]  ;;  %s119_s0 = sshll.u32 %s181_s7, 4  ;;  %s120_s0 = int_to_ptr.vmem [resolvable:$true] %s119_s0 }
   0x8   :  { %s154_s2 = scalar_lea.vmem %s120_s0, 16  ;;  %s158_s8 = scalar_lea.vmem %s120_s0, 32 }
   0x9   :  { %v109_v17 = vld [vmem:[#allocation2] sm:$0x1]  ;;  %p155_p0 = scmp.ne.s32.totalorder %s120_s0, %s154_s2  ;;  %p159_p1 = scmp.lt.s32.totalorder %s120_s0, %s120_s0 }
   0xa   :  { %149 = vmatpush3.bf16.msra.mxu0 %v148_v8  ;;  %p160_p2 = scmp.lt.s32.totalorder %s158_s8, %s154_s2 }
   0xc   :  { %p161_p3 = por %p160_p2, %p159_p1 }
   0xd   :  { %142 = vmatmul.mubr.msk.f32.vlgmr.msra.gmra.mrb[0].mxu0 %vm29_vm1, %v23_v9 }
   0xe   :  { %p162_p4 = pnand %p161_p3, %p155_p0 }
  0xe0   :  { %v99_v11 = vpop.f32.mrb[0].mxu0 }
  0xe1   :  { %v100_v13 = vadd.f32 %v99_v11, %v28_v10  ;;  %v143_v14 = vpop.f32.mrb[1].mxu0 }
  0xe3   :  { %v104_v15 = vmul.f32 %v103_v12, %v100_v13 }
  0xe5   :  { %v106_v16 = vsel %vm105_vm2, %v104_v15, 0.0 }
  0xe6   :  { %107 = vadd.xlane.f32.xlu0 %v106_v16 }
 0x173   :  { %v108_v18 = vpop.xlane.xlu0 %107 }
 0x174   :  { %v110_v19 = vadd.f32 %v109_v17, %v108_v18 }
 0x176   :  { %112 = vst.msk [vmem:[#allocation3] sm:$0x1] %vm111_vm3, %v110_v19 }
 0x177   :  { %165 = shalt.err (!%p162_p4)
}
 0x178   :  { %s166_s10 = scalar_lea.hbm %s253_s5, 16 }
 0x179   :  { %p167_p5 = scmp.ne.s32.totalorder %s253_s5, %s166_s10  ;;  %p170_p6 = scmp.lt.u32.totalorder %s166_s10, %s253_s5 }
 0x17b   :  { %p172_p7 = pnand %p170_p6, %p167_p5 }
 0x17d   :  { %175 = shalt.err (!%p172_p7)
}
 0x17e   :  { %122 = dma.vmem_to_hbm [thread:$0]  %s120_s0, 16, %s253_s5, [#allocation4]  }
 0x17f   :  { %176 = dma.done.wait [#allocation4], 16  }
 0x180   :  { %177 = vsyncadd [#allocation4], 4294967280 }
 0x181   :  { %126 = vsyncpa [#allocation4], 1 }

</bundles_post_ra>
